<compile_context>
chip_gen: v7x
topology: tpu7x:2x2x1
jax: 0.10.0
libtpu: 0.0.40
codegen_flags: <defaults>
</compile_context>

<pallas_src>
import functools
import math

import jax
import jax.numpy as jnp
from jax.experimental import pallas as pl
from jax.experimental.pallas import tpu as pltpu


_LANE = 128          # feature dims padded to multiples of this
_SUBLANE = 8
_MIN_TM = 16         # row alignment safe for bf16 (16,128) native tiles
_MIB = 1024 * 1024


def _round_up(x, m):
    return ((x + m - 1) // m) * m


# ---------------------------------------------------------------------------
# Generation-aware VMEM budgets / tile defaults.
# ---------------------------------------------------------------------------
_VMEM_CAP_CACHE = None


def _vmem_capacity_bytes():
    """Physical per-core VMEM (64 MiB on v7x, 128 MiB on v5e/v6e)."""
    global _VMEM_CAP_CACHE
    if _VMEM_CAP_CACHE is None:
        cap = 64 * _MIB                      # conservative default (v7x)
        try:
            cap = int(pltpu.get_tpu_info().vmem_capacity_bytes)
        except Exception:
            pass
        if cap <= 0:
            cap = 64 * _MIB
        _VMEM_CAP_CACHE = cap
    return _VMEM_CAP_CACHE


def _vmem_limit_bytes():
    # ~104 MiB scoped limit on v5e/v6e (128 MiB phys), 48 MiB on v7x (64 MiB).
    return 104 * _MIB if _vmem_capacity_bytes() >= 96 * _MIB else 48 * _MIB


def _fused_vmem_budget():
    return _vmem_limit_bytes() - 8 * _MIB    # 96 MiB (v5e/v6e) / 40 MiB (v7x)


def _default_tiles():
    if _vmem_capacity_bytes() >= 96 * _MIB:  # v5e / v6e: plenty of VMEM
        return 512, 512, 1024
    return 256, 256, 512                      # v7x: 64 MiB VMEM ceiling


# ---------------------------------------------------------------------------
# Fused whole-MLP kernel: per-layer weights resident in VMEM, grid over batch
# tiles only, intermediate activations staged through VMEM scratch.
# ---------------------------------------------------------------------------
def _fused_mlp_kernel(*refs, depth, compute_dtype):
    # refs = (x, w_0..w_{d-1}, b_0..b_{d-1}, o, [h_buf0, h_buf1])
    x_ref = refs[0]
    w_refs = refs[1:1 + depth]
    b_refs = refs[1 + depth:1 + 2 * depth]
    o_ref = refs[1 + 2 * depth]
    h_bufs = refs[2 + 2 * depth:]            # 0/1/2 VMEM activation buffers
    n_bufs = len(h_bufs)

    for i in range(depth):                   # depth is static -> unrolled
        k_i, n_i = w_refs[i].shape
        if i == 0:
            h = x_ref[...]
        else:
            h = h_bufs[(i - 1) % n_bufs][:, :k_i]
        acc = jnp.dot(h.astype(compute_dtype), w_refs[i][...],
                      preferred_element_type=jnp.float32)
        acc = acc + b_refs[i][...]           # bias add in f32
        if i < depth - 1:
            acc = jnp.maximum(acc, 0.0)      # ReLU in f32 (VPU-native)
            # Stage through VMEM scratch: bounds vreg live ranges across the
            # unrolled layer loop (spills become scheduled vld/vst).
            dst = h_bufs[i % n_bufs]
            dst[:, :n_i] = acc.astype(dst.dtype)
        else:
            o_ref[...] = acc.astype(o_ref.dtype)


def _pick_fused_tm(M):
    if M <= _MIN_TM:
        return _round_up(max(M, 1), _MIN_TM)
    if M >= 1024:
        return 512
    # Prefer >=2 batch tiles so the "parallel" grid axis can use both v7x TCs.
    return min(256, _round_up(-(-M // 2), _MIN_TM))


def _fused_mlp_call(x, w_list, b_list, *, dims_pad, compute_dtype):
    depth = len(w_list)
    M, in_f = x.shape
    k0, n_last = dims_pad[0], dims_pad[-1]

    tm = _pick_fused_tm(M)
    m_pad = _round_up(M, tm)

    x_pad = x
    if m_pad != M or k0 != in_f:
        x_pad = jnp.pad(x, ((0, m_pad - M), (0, k0 - in_f)))
    x_pad = x_pad.astype(compute_dtype)       # bf16 (default) MXU operands

    if depth > 1:
        f_hid = max(dims_pad[1:depth])
        n_bufs = 1 if depth == 2 else 2
        scratch = [pltpu.VMEM((tm, f_hid), compute_dtype)] * n_bufs
    else:
        scratch = []

    vmem_resident = pl.BlockSpec(memory_space=pltpu.MemorySpace.VMEM)
    out = pl.pallas_call(
        functools.partial(_fused_mlp_kernel, depth=depth,
                          compute_dtype=compute_dtype),
        out_shape=jax.ShapeDtypeStruct((m_pad, n_last), jnp.float32),
        grid_spec=pltpu.PrefetchScalarGridSpec(
            num_scalar_prefetch=0,
            grid=(m_pad // tm,),
            in_specs=[pl.BlockSpec((tm, k0), lambda i: (i, 0))]
                     + [vmem_resident] * (2 * depth),
            out_specs=pl.BlockSpec((tm, n_last), lambda i: (i, 0)),
            scratch_shapes=scratch,
        ),
        compiler_params=pltpu.CompilerParams(
            dimension_semantics=("parallel",),     # megacore sharding on v7x
            vmem_limit_bytes=_vmem_limit_bytes(),
        ),
    )(x_pad, *w_list, *b_list)
    return out[:M]


# ---------------------------------------------------------------------------
# Generic M/N/K-tiled linear kernel (fallback for layers too wide to fuse).
# ---------------------------------------------------------------------------
def _linear_tiled_kernel(x_ref, w_ref, b_ref, o_ref, acc_ref, *, apply_relu):
    @pl.when(pl.program_id(2) == 0)
    def _():
        acc_ref[...] = jnp.zeros_like(acc_ref)

    acc_ref[...] += jnp.dot(x_ref[...], w_ref[...],
                            preferred_element_type=jnp.float32)

    @pl.when(pl.program_id(2) == pl.num_programs(2) - 1)
    def _():
        out = acc_ref[...] + b_ref[...]
        if apply_relu:
            out = jnp.maximum(out, 0.0)
        o_ref[...] = out.astype(o_ref.dtype)


def _pick_tile(dim, cap):
    """Largest multiple of 128 <= cap that divides dim (dim % 128 == 0).

    Avoids the old 'drop straight to 128' cliff when dim % cap != 0."""
    if dim <= cap:
        return dim
    for t in range(cap - cap % _LANE, _LANE - 1, -_LANE):
        if dim % t == 0:
            return t
    return _LANE


def pallas_linear_tiled(x, w, b, *, apply_relu, out_dtype=jnp.float32,
                        tm=None, tn=None, tk=None):
    """y = x @ w + b (optional ReLU), M/N/K tiled with an f32 accumulator.

    x: (M, K), w: (K, N), b: (1, N) f32; K and N must be multiples of 128
    (feature padding is done once by the caller).  MXU operand dtype follows
    the weight dtype (bf16 by default from make_mlp_forward)."""
    M, K = x.shape
    Kw, N = w.shape
    assert K == Kw and K % _LANE == 0 and N % _LANE == 0
    assert b.shape == (1, N)

    def_tm, def_tn, def_tk = _default_tiles()
    tm = def_tm if tm is None else tm
    tn = def_tn if tn is None else tn
    tk = def_tk if tk is None else tk

    tk_eff = _pick_tile(K, tk)
    tn_eff = _pick_tile(N, tn)
    tm_eff = tm if M > tm else _round_up(max(M, 1), _MIN_TM)
    m_pad = _round_up(M, tm_eff)

    x_in = x if m_pad == M else jnp.pad(x, ((0, m_pad - M), (0, 0)))
    x_in = x_in.astype(w.dtype)              # no-op when caller pre-casts

    grid = (m_pad // tm_eff, N // tn_eff, K // tk_eff)

    out = pl.pallas_call(
        functools.partial(_linear_tiled_kernel, apply_relu=apply_relu),
        out_shape=jax.ShapeDtypeStruct((m_pad, N), out_dtype),
        grid_spec=pltpu.PrefetchScalarGridSpec(
            num_scalar_prefetch=0,
            grid=grid,
            in_specs=[
                pl.BlockSpec((tm_eff, tk_eff), lambda i, j, k: (i, k)),
                pl.BlockSpec((tk_eff, tn_eff), lambda i, j, k: (k, j)),
                pl.BlockSpec((1, tn_eff), lambda i, j, k: (0, j)),
            ],
            out_specs=pl.BlockSpec((tm_eff, tn_eff), lambda i, j, k: (i, j)),
            scratch_shapes=[pltpu.VMEM((tm_eff, tn_eff), jnp.float32)],
        ),
        compiler_params=pltpu.CompilerParams(
            dimension_semantics=("parallel", "parallel", "arbitrary"),
            vmem_limit_bytes=_vmem_limit_bytes(),
        ),
    )(x_in, w, b)
    return out if m_pad == M else out[:M]


# ---------------------------------------------------------------------------
# Parameter setup & forward builder (mirrors the PyTorch MLP module).
# ---------------------------------------------------------------------------
def init_mlp_params(key, depth, width, in_ch, out_ch):
    """PyTorch nn.Linear default init (uniform +-1/sqrt(fan_in)).
    Weights are stored transposed: (fan_in, fan_out)."""
    params = []
    for i in range(depth):
        if i == 0:
            fan_in, fan_out = in_ch, width
        elif i == depth - 1:
            fan_in, fan_out = width, out_ch
        else:
            fan_in, fan_out = width, width
        key, kw, kb = jax.random.split(key, 3)
        bound = 1.0 / math.sqrt(fan_in)
        w = jax.random.uniform(kw, (fan_in, fan_out), jnp.float32, -bound, bound)
        b = jax.random.uniform(kb, (fan_out,), jnp.float32, -bound, bound)
        params.append((w, b))
    return params


def make_mlp_forward(params, *, use_weight_norm=False, last_activation_func=None,
                     compute_dtype=jnp.bfloat16, force_tiled=False):
    """Precompute (once) padded per-layer params and return forward(x)."""
    depth = len(params)
    in_ch = params[0][0].shape[0]
    out_ch = params[-1][0].shape[1]
    cdt = jnp.dtype(compute_dtype)

    # weight_norm: PyTorch initialises g = ||v||, so w_eff = g * v/||v|| == v
    # exactly; precompute once, guarding all-zero columns (0 instead of NaN).
    if use_weight_norm:
        eff = []
        for w, b in params:
            norm = jnp.sqrt(jnp.sum(w * w, axis=0, keepdims=True))
            safe = jnp.where(norm > 0, norm, 1.0)
            g = norm
            eff.append((g * (w / safe), b))    # bit-exact identity for norm>0
        params = eff

    dims = [in_ch] + [w.shape[1] for (w, _) in params]
    dims_pad = [_round_up(d, _LANE) for d in dims]

    # Per-layer padding (no uniform FxF): weights in compute_dtype, biases f32.
    w_pad_list, b_pad_list = [], []
    for li, (w, b) in enumerate(params):
        kp, np_ = dims_pad[li], dims_pad[li + 1]
        wp = jnp.pad(w, ((0, kp - w.shape[0]),
                         (0, np_ - w.shape[1]))).astype(compute_dtype)
        bp = jnp.pad(b, (0, np_ - b.shape[0])).reshape(1, np_).astype(jnp.float32)
        w_pad_list.append(wp)
        b_pad_list.append(bp)

    # VMEM footprint of keeping everything resident in the fused kernel
    # (worst-case tm = 512 batch tile, double-buffered input/output blocks).
    tm_max = 512
    f_hid = max(dims_pad[1:depth]) if depth > 1 else 0
    w_bytes = sum(dims_pad[i] * dims_pad[i + 1] for i in range(depth)) * cdt.itemsize
    b_bytes = sum(_SUBLANE * dims_pad[i + 1] for i in range(depth)) * 4
    scr_bytes = 2 * tm_max * f_hid * cdt.itemsize
    io_bytes = 2 * tm_max * dims_pad[0] * cdt.itemsize + 2 * tm_max * dims_pad[-1] * 4
    fused_ok = (w_bytes + b_bytes + scr_bytes + io_bytes) <= _fused_vmem_budget()

    if fused_ok and not force_tiled:
        def forward(x):
            y = _fused_mlp_call(x, w_pad_list, b_pad_list,
                                dims_pad=dims_pad, compute_dtype=compute_dtype)
            y = y[:, :out_ch]
            if last_activation_func is not None:
                # user-supplied callable (JAX equivalent of the torch module arg)
                y = last_activation_func(y)
            return y
        return jax.jit(forward)

    # Fallback: per-layer tiled linears.  Batch + features padded ONCE before
    # the loop; intermediate activations stay padded and in compute_dtype.
    def_tm, def_tn, def_tk = _default_tiles()

    def forward(x):
        M = x.shape[0]
        tm = def_tm if M > def_tm else _round_up(max(M, 1), _MIN_TM)
        m_pad = _round_up(M, tm)
        h = jnp.pad(x.astype(jnp.float32),
                    ((0, m_pad - M), (0, dims_pad[0] - x.shape[1])))
        h = h.astype(compute_dtype)
        for i in range(depth):
            last = (i == depth - 1)
            h = pallas_linear_tiled(
                h, w_pad_list[i], b_pad_list[i], apply_relu=not last,
                out_dtype=(jnp.float32 if last else compute_dtype),
                tm=tm, tn=def_tn, tk=def_tk)
        y = h[:M, :out_ch]
        if last_activation_func is not None:
            y = last_activation_func(y)
        return y
    return jax.jit(forward)


def mlp_reference(x, params, last_activation_func=None,
                  compute_dtype=jnp.float32):
    h = x
    depth = len(params)
    for i, (w, b) in enumerate(params):
        h = jnp.dot(h.astype(compute_dtype), w.astype(compute_dtype),
                    preferred_element_type=jnp.float32) + b
        if i < depth - 1:
            h = jnp.maximum(h, 0.0)
    if last_activation_func is not None:
        h = last_activation_func(h)
    return h


if __name__ == "__main__":
    key = jax.random.PRNGKey(0)
    kparams, kx, krest = jax.random.split(key, 3)

    # Config consistent with the module: depth=3, width=32, in_ch=4, out_ch=4.
    depth, width, in_ch, out_ch, batch = 3, 32, 4, 4, 2
    params = init_mlp_params(kparams, depth, width, in_ch, out_ch)
    x = jax.random.normal(kx, (batch, in_ch), jnp.float32)

    # 1) Fused whole-MLP kernel, default bf16 MXU operands / f32 accumulate.
    fwd = make_mlp_forward(params)
    y = jax.block_until_ready(fwd(x))
    y_ref_bf16 = mlp_reference(x, params, compute_dtype=jnp.bfloat16)
    assert y.shape == (batch, out_ch), y.shape
    assert jnp.allclose(y, y_ref_bf16, atol=2e-2, rtol=2e-2), (y, y_ref_bf16)

    # 2) Fused, f32 operands + weight_norm (exact identity reparametrization).
    fwd_f32 = make_mlp_forward(params, use_weight_norm=True,
                               compute_dtype=jnp.float32)
    y32 = jax.block_until_ready(fwd_f32(x))
    y_ref = mlp_reference(x, params)
    assert jnp.allclose(y32, y_ref, atol=1e-4, rtol=1e-4), (y32, y_ref)

    # 3) Tiled per-layer fallback path (forced), bf16 intermediates + tanh head.
    fwd_tiled = make_mlp_forward(params, last_activation_func=jnp.tanh,
                                 force_tiled=True)
    y_t = jax.block_until_ready(fwd_tiled(x))
    y_t_ref = jnp.tanh(y_ref_bf16)
    assert y_t.shape == (batch, out_ch), y_t.shape
    assert jnp.allclose(y_t, y_t_ref, atol=2e-2, rtol=2e-2), (y_t, y_t_ref)

    # 4) Standalone M/N/K-tiled linear; K=384 with tk=256 exercises the
    #    largest-divisor tile pick (128-wide K steps, 3 accumulation steps).
    ka, kb2, kc = jax.random.split(krest, 3)
    M, K, N = 192, 384, 256
    xa = jax.random.normal(ka, (M, K), jnp.float32)
    wa = jax.random.normal(kb2, (K, N), jnp.float32) / math.sqrt(K)
    ba = jax.random.normal(kc, (1, N), jnp.float32)
    ya = jax.block_until_ready(
        pallas_linear_tiled(xa, wa, ba, apply_relu=True, tm=128, tn=256, tk=256))
    ya_ref = jnp.maximum(xa @ wa + ba, 0.0)
    assert ya.shape == (M, N), ya.shape
    assert jnp.allclose(ya, ya_ref, atol=5e-3, rtol=5e-3)

    print("KERNEL_OK")
</pallas_src>

<mosaic_0001>
module attributes {stable_mosaic.version = 11 : i64} {
  func.func @_fused_mlp_kernel(%arg0: i32, %arg1: memref<16x128xbf16, #tpu.memory_space<vmem>>, %arg2: memref<128x128xbf16, #tpu.memory_space<vmem>>, %arg3: memref<128x128xbf16, #tpu.memory_space<vmem>>, %arg4: memref<128x128xbf16, #tpu.memory_space<vmem>>, %arg5: memref<1x128xf32, #tpu.memory_space<vmem>>, %arg6: memref<1x128xf32, #tpu.memory_space<vmem>>, %arg7: memref<1x128xf32, #tpu.memory_space<vmem>>, %arg8: memref<16x128xf32, #tpu.memory_space<vmem>>, %arg9: memref<16x128xbf16, #tpu.memory_space<vmem>>, %arg10: memref<16x128xbf16, #tpu.memory_space<vmem>>) attributes {dimension_semantics = [#tpu.dimension_semantics<parallel>], iteration_bounds = array<i64: 1>, scalar_prefetch = 0 : i64, scratch_operands = 2 : i64, tpu.core_type = #tpu.core_type<tc>, window_params = [{transform_indices = @transform_0, window_bounds = array<i64: 16, 128>}, {pipeline_mode = #tpu.pipeline_mode<synchronous>, transform_indices = @transform_1, window_bounds = array<i64: 128, 128>}, {pipeline_mode = #tpu.pipeline_mode<synchronous>, transform_indices = @transform_2, window_bounds = array<i64: 128, 128>}, {pipeline_mode = #tpu.pipeline_mode<synchronous>, transform_indices = @transform_3, window_bounds = array<i64: 128, 128>}, {pipeline_mode = #tpu.pipeline_mode<synchronous>, transform_indices = @transform_4, window_bounds = array<i64: 1, 128>}, {pipeline_mode = #tpu.pipeline_mode<synchronous>, transform_indices = @transform_5, window_bounds = array<i64: 1, 128>}, {pipeline_mode = #tpu.pipeline_mode<synchronous>, transform_indices = @transform_6, window_bounds = array<i64: 1, 128>}, {transform_indices = @transform_7, window_bounds = array<i64: 16, 128>}]} {
    %c0 = arith.constant 0 : index
    %c0_0 = arith.constant 0 : index
    %0 = vector.load %arg1[%c0, %c0_0] : memref<16x128xbf16, #tpu.memory_space<vmem>>, vector<16x128xbf16>
    %c0_1 = arith.constant 0 : index
    %c0_2 = arith.constant 0 : index
    %1 = vector.load %arg2[%c0_1, %c0_2] : memref<128x128xbf16, #tpu.memory_space<vmem>>, vector<128x128xbf16>
    %cst = arith.constant dense<0.000000e+00> : vector<16x128xf32>
    %2 = tpu.matmul %0, %1, %cst {dimension_numbers = #tpu.dot_dimension_numbers<[1], [0], [0], [1], [0, 0, 1, 1], [], []>} : vector<16x128xbf16>, vector<128x128xbf16>, vector<16x128xf32> -> vector<16x128xf32>
    %c0_3 = arith.constant 0 : index
    %c0_4 = arith.constant 0 : index
    %3 = vector.load %arg5[%c0_3, %c0_4] : memref<1x128xf32, #tpu.memory_space<vmem>>, vector<1x128xf32>
    %4 = vector.broadcast %3 : vector<1x128xf32> to vector<16x128xf32>
    %5 = arith.addf %2, %4 : vector<16x128xf32>
    %cst_5 = arith.constant 0.000000e+00 : f32
    %6 = vector.broadcast %cst_5 : f32 to vector<16x128xf32>
    %7 = arith.maximumf %5, %6 : vector<16x128xf32>
    %8 = arith.truncf %7 : vector<16x128xf32> to vector<16x128xbf16>
    %c0_6 = arith.constant 0 : index
    %c0_7 = arith.constant 0 : index
    %9 = vector.load %arg9[%c0_6, %c0_7] : memref<16x128xbf16, #tpu.memory_space<vmem>>, vector<16x128xbf16>
    tpu.vector_store %arg9[%c0_6, %c0_7], %8 {strides = array<i32>} : memref<16x128xbf16, #tpu.memory_space<vmem>>, vector<16x128xbf16>,
    %c0_8 = arith.constant 0 : index
    %c0_9 = arith.constant 0 : index
    %10 = vector.load %arg9[%c0_8, %c0_9] : memref<16x128xbf16, #tpu.memory_space<vmem>>, vector<16x128xbf16>
    %c0_10 = arith.constant 0 : index
    %c0_11 = arith.constant 0 : index
    %11 = vector.load %arg3[%c0_10, %c0_11] : memref<128x128xbf16, #tpu.memory_space<vmem>>, vector<128x128xbf16>
    %cst_12 = arith.constant dense<0.000000e+00> : vector<16x128xf32>
    %12 = tpu.matmul %10, %11, %cst_12 {dimension_numbers = #tpu.dot_dimension_numbers<[1], [0], [0], [1], [0, 0, 1, 1], [], []>} : vector<16x128xbf16>, vector<128x128xbf16>, vector<16x128xf32> -> vector<16x128xf32>
    %c0_13 = arith.constant 0 : index
    %c0_14 = arith.constant 0 : index
    %13 = vector.load %arg6[%c0_13, %c0_14] : memref<1x128xf32, #tpu.memory_space<vmem>>, vector<1x128xf32>
    %14 = vector.broadcast %13 : vector<1x128xf32> to vector<16x128xf32>
    %15 = arith.addf %12, %14 : vector<16x128xf32>
    %cst_15 = arith.constant 0.000000e+00 : f32
    %16 = vector.broadcast %cst_15 : f32 to vector<16x128xf32>
    %17 = arith.maximumf %15, %16 : vector<16x128xf32>
    %18 = arith.truncf %17 : vector<16x128xf32> to vector<16x128xbf16>
    %c0_16 = arith.constant 0 : index
    %c0_17 = arith.constant 0 : index
    %19 = vector.load %arg10[%c0_16, %c0_17] : memref<16x128xbf16, #tpu.memory_space<vmem>>, vector<16x128xbf16>
    tpu.vector_store %arg10[%c0_16, %c0_17], %18 {strides = array<i32>} : memref<16x128xbf16, #tpu.memory_space<vmem>>, vector<16x128xbf16>,
    %c0_18 = arith.constant 0 : index
    %c0_19 = arith.constant 0 : index
    %20 = vector.load %arg10[%c0_18, %c0_19] : memref<16x128xbf16, #tpu.memory_space<vmem>>, vector<16x128xbf16>
    %c0_20 = arith.constant 0 : index
    %c0_21 = arith.constant 0 : index
    %21 = vector.load %arg4[%c0_20, %c0_21] : memref<128x128xbf16, #tpu.memory_space<vmem>>, vector<128x128xbf16>
    %cst_22 = arith.constant dense<0.000000e+00> : vector<16x128xf32>
    %22 = tpu.matmul %20, %21, %cst_22 {dimension_numbers = #tpu.dot_dimension_numbers<[1], [0], [0], [1], [0, 0, 1, 1], [], []>} : vector<16x128xbf16>, vector<128x128xbf16>, vector<16x128xf32> -> vector<16x128xf32>
    %c0_23 = arith.constant 0 : index
    %c0_24 = arith.constant 0 : index
    %23 = vector.load %arg7[%c0_23, %c0_24] : memref<1x128xf32, #tpu.memory_space<vmem>>, vector<1x128xf32>
    %24 = vector.broadcast %23 : vector<1x128xf32> to vector<16x128xf32>
    %25 = arith.addf %22, %24 : vector<16x128xf32>
    %c0_25 = arith.constant 0 : index
    %c0_26 = arith.constant 0 : index
    %26 = vector.load %arg8[%c0_25, %c0_26] : memref<16x128xf32, #tpu.memory_space<vmem>>, vector<16x128xf32>
    tpu.vector_store %arg8[%c0_25, %c0_26], %25 {strides = array<i32>} : memref<16x128xf32, #tpu.memory_space<vmem>>, vector<16x128xf32>,
    return
  }
  func.func @transform_0(%arg0: i32) -> (i32, i32) {
    %c0_i32 = arith.constant 0 : i32
    %c0_i32_0 = arith.constant 0 : i32
    return %arg0, %c0_i32 : i32, i32
  }
  func.func @transform_1(%arg0: i32) -> (i32, i32) {
    %c0_i32 = arith.constant 0 : i32
    %c0_i32_0 = arith.constant 0 : i32
    %c0_i32_1 = arith.constant 0 : i32
    return %c0_i32, %c0_i32_0 : i32, i32
  }
  func.func @transform_2(%arg0: i32) -> (i32, i32) {
    %c0_i32 = arith.constant 0 : i32
    %c0_i32_0 = arith.constant 0 : i32
    %c0_i32_1 = arith.constant 0 : i32
    return %c0_i32, %c0_i32_0 : i32, i32
  }
  func.func @transform_3(%arg0: i32) -> (i32, i32) {
    %c0_i32 = arith.constant 0 : i32
    %c0_i32_0 = arith.constant 0 : i32
    %c0_i32_1 = arith.constant 0 : i32
    return %c0_i32, %c0_i32_0 : i32, i32
  }
  func.func @transform_4(%arg0: i32) -> (i32, i32) {
    %c0_i32 = arith.constant 0 : i32
    %c0_i32_0 = arith.constant 0 : i32
    %c0_i32_1 = arith.constant 0 : i32
    return %c0_i32, %c0_i32_0 : i32, i32
  }
  func.func @transform_5(%arg0: i32) -> (i32, i32) {
    %c0_i32 = arith.constant 0 : i32
    %c0_i32_0 = arith.constant 0 : i32
    %c0_i32_1 = arith.constant 0 : i32
    return %c0_i32, %c0_i32_0 : i32, i32
  }
  func.func @transform_6(%arg0: i32) -> (i32, i32) {
    %c0_i32 = arith.constant 0 : i32
    %c0_i32_0 = arith.constant 0 : i32
    %c0_i32_1 = arith.constant 0 : i32
    return %c0_i32, %c0_i32_0 : i32, i32
  }
  func.func @transform_7(%arg0: i32) -> (i32, i32) {
    %c0_i32 = arith.constant 0 : i32
    %c0_i32_0 = arith.constant 0 : i32
    return %arg0, %c0_i32 : i32, i32
  }
}

</mosaic_0001>

<bundles_post_ra>
// kernel: forward.1
= control target key start
LH: loop header
LB: loop body
LE: loop exit
PB: predicated region body
PF: predicated region fallthrough
CT: control target
= control target key end

     0   :  { %12 = vsyncpa [#allocation5], 0  ;;  %s794_s0 = inlined_call_operand.vmem [shape: bf16[16,128], index: 0, kind: input, shape index: {}]   ;;  %s795_s1 = inlined_call_operand.hbm [shape: bf16[128,128], index: 1, kind: input, shape index: {}]   ;;  %s796_s2 = inlined_call_operand.hbm [shape: bf16[128,128], index: 2, kind: input, shape index: {}]   ;;  %s797_s3 = inlined_call_operand.hbm [shape: bf16[128,128], index: 3, kind: input, shape index: {}]   ;;  %s798_s4 = inlined_call_operand.vmem [shape: f32[1,128], index: 4, kind: input, shape index: {}]   ;;  %s799_s5 = inlined_call_operand.vmem [shape: f32[1,128], index: 5, kind: input, shape index: {}]   ;;  %s800_s6 = inlined_call_operand.vmem [shape: f32[1,128], index: 6, kind: input, shape index: {}]   ;;  %s801_s7 = inlined_call_operand.vmem [shape: f32[16,128], index: 7, kind: output, shape index: {}]  }
   0x1   :  { %13 = vsyncpa [#allocation7], 0  ;;  %s647_s24 = smov [#allocation6]   ;;  %s648_s26 = smov [#allocation4]  }
   0x2   :  { %s33_s25 = sshll.u32 %s647_s24, 4  ;;  %s21_s27 = sshll.u32 %s648_s26, 4  ;;  %s34_s25 = int_to_ptr.vmem [resolvable:$true] %s33_s25  ;;  %s694_s27 = int_to_ptr.vmem [resolvable:$true] %s21_s27 }
   0x3   :  { %s577_s30 = scalar_lea.hbm %s796_s2, 1024 }
   0x4   :  { %p578_p0 = scmp.ne.s32.totalorder %s796_s2, %s577_s30  ;;  %p581_p1 = scmp.lt.u32.totalorder %s577_s30, %s796_s2 }
   0x6   :  { %p583_p2 = pnand %p581_p1, %p578_p0 }
   0x8   :  { %586 = shalt.err (!%p583_p2)
}
   0x9   :  { %s587_s12 = scalar_lea.vmem %s34_s25, 1024  ;;  %p592_p4 = scmp.lt.s32.totalorder %s34_s25, %s34_s25 }
   0xa   :  { %p588_p3 = scmp.ne.s32.totalorder %s34_s25, %s587_s12  ;;  %p593_p5 = scmp.lt.s32.totalorder %s587_s12, %s587_s12 }
   0xc   :  { %p594_p6 = por %p593_p5, %p592_p4 }
   0xe   :  { %p595_p7 = pnand %p594_p6, %p588_p3 }
  0x10   :  { %598 = shalt.err (!%p595_p7)
}
  0x11   :  { %s649_s13 = smov 64   ;;  %s650_s14 = smov 4  }
  0x12   :  { %39 = dma.hbm_to_vmem [thread:$0]  %s796_s2, 1024, %s34_s25, [#allocation7], %s649_s13, %s649_s13, %s650_s14  }
  0x13   :  { %s599_s19 = scalar_lea.hbm %s795_s1, 1024 }
  0x14   :  { %p600_p8 = scmp.ne.s32.totalorder %s795_s1, %s599_s19  ;;  %p603_p9 = scmp.lt.u32.totalorder %s599_s19, %s795_s1 }
  0x16   :  { %p605_p10 = pnand %p603_p9, %p600_p8 }
  0x18   :  { %608 = shalt.err (!%p605_p10)
}
  0x19   :  { %s609_s24 = scalar_lea.vmem %s694_s27, 1024  ;;  %p614_p12 = scmp.lt.s32.totalorder %s694_s27, %s694_s27 }
  0x1a   :  { %p610_p11 = scmp.ne.s32.totalorder %s694_s27, %s609_s24  ;;  %p615_p13 = scmp.lt.s32.totalorder %s609_s24, %s609_s24 }
  0x1c   :  { %p616_p0 = por %p615_p13, %p614_p12 }
  0x1e   :  { %p617_p1 = pnand %p616_p0, %p610_p11 }
  0x20   :  { %620 = shalt.err (!%p617_p1)
}
  0x21   :  { %27 = dma.hbm_to_vmem [thread:$0]  %s795_s1, 1024, %s694_s27, [#allocation5], %s649_s13, %s649_s13, %s650_s14  }
  0x22   :  { %s651_s26 = smov [#allocation8]   ;;  %s621_s8 = scalar_lea.hbm %s797_s3, 1024 }
  0x23   :  { %s45_s28 = sshll.u32 %s651_s26, 4  ;;  %p622_p2 = scmp.ne.s32.totalorder %s797_s3, %s621_s8  ;;  %s46_s28 = int_to_ptr.vmem [resolvable:$true] %s45_s28 }
  0x24   :  { %p625_p3 = scmp.lt.u32.totalorder %s621_s8, %s797_s3 }
  0x26   :  { %p627_p4 = pnand %p625_p3, %p622_p2 }
  0x28   :  { %630 = shalt.err (!%p627_p4)
}
  0x29   :  { %s631_s15 = scalar_lea.vmem %s46_s28, 1024  ;;  %p636_p6 = scmp.lt.s32.totalorder %s46_s28, %s46_s28 }
  0x2a   :  { %p632_p5 = scmp.ne.s32.totalorder %s46_s28, %s631_s15  ;;  %p637_p7 = scmp.lt.s32.totalorder %s631_s15, %s631_s15 }
  0x2c   :  { %p638_p8 = por %p637_p7, %p636_p6 }
  0x2e   :  { %p639_p9 = pnand %p638_p8, %p632_p5 }
  0x30   :  { %642 = shalt.err (!%p639_p9)
}
  0x31   :  { %51 = dma.hbm_to_vmem [thread:$0]  %s797_s3, 1024, %s46_s28, [#allocation7], %s649_s13, %s649_s13, %s650_s14  }
  0x32   :  { %643 = dma.done.wait [#allocation5], 1024  }
  0x33   :  { %644 = vsyncadd [#allocation5], 4294966272 }
  0x34   :  { %645 = dma.done.wait [#allocation7], 2048  }
  0x35   :  { %646 = vsyncadd [#allocation7], 4294965248  ;;  %v652_v0 = vmov 0.0   ;;  %vm653_vm0 = vmmov 0   ;;  %v552_v1 = vld [vmem:[#allocation4] sm:$0xff]   ;;  %v553_v2 = vld [vmem:[#allocation4 + $0x8] sm:$0xff]  }
  0x36   :  { %485 = vmatprep.subr.bf16.mxu0 %v652_v0  ;;  %501 = vmatprep.mubr.msk.bf16.mxu0 %vm653_vm0, %v652_v0  ;;  %v554_v3 = vld [vmem:[#allocation4 + $0x10] sm:$0xff]   ;;  %v561_v4 = vld [vmem:[#allocation6] sm:$0xff]   ;;  %v555_v5 = vld [vmem:[#allocation4 + $0x18] sm:$0xff]  }
  0x37   :  { %505 = vmatprep.subr.bf16.mxu1 %v652_v0  ;;  %521 = vmatprep.mubr.msk.bf16.mxu1 %vm653_vm0, %v652_v0  ;;  %v562_v6 = vld [vmem:[#allocation6 + $0x8] sm:$0xff]   ;;  %v556_v7 = vld [vmem:[#allocation4 + $0x20] sm:$0xff]   ;;  %v563_v8 = vld [vmem:[#allocation6 + $0x10] sm:$0xff]  }
  0x38   :  { %486 = vmatpush3.bf16.msra.mxu0 %v552_v1  ;;  %506 = vmatpush3.bf16.msra.mxu1 %v561_v4  ;;  %v557_v9 = vld [vmem:[#allocation4 + $0x28] sm:$0xff]   ;;  %v564_v10 = vld [vmem:[#allocation6 + $0x18] sm:$0xff]   ;;  %v558_v11 = vld [vmem:[#allocation4 + $0x30] sm:$0xff]  }
  0x39   :  { %487 = vmatprep.subr.bf16.mxu0 %v652_v0  ;;  %507 = vmatprep.subr.bf16.mxu1 %v652_v0  ;;  %v565_v12 = vld [vmem:[#allocation6 + $0x20] sm:$0xff]   ;;  %v559_v13 = vld [vmem:[#allocation4 + $0x38] sm:$0xff]   ;;  %v566_v14 = vld [vmem:[#allocation6 + $0x28] sm:$0xff]  }
  0x3a   :  { %v560_v15 = vld [vmem:[%s794_s0] sm:$0xff]   ;;  %v567_v16 = vld [vmem:[#allocation6 + $0x30] sm:$0xff]   ;;  %v568_v17 = vld [vmem:[#allocation6 + $0x38] sm:$0xff]  }
  0x3b   :  { %v569_v18 = vld [vmem:[#allocation8] sm:$0xff]   ;;  %v570_v19 = vld [vmem:[#allocation8 + $0x8] sm:$0xff]   ;;  %v571_v20 = vld [vmem:[#allocation8 + $0x10] sm:$0xff]  }
  0x3c   :  { %488 = vmatpush3.bf16.msra.mxu0 %v553_v2  ;;  %508 = vmatpush3.bf16.msra.mxu1 %v562_v6  ;;  %v572_v21 = vld [vmem:[#allocation8 + $0x18] sm:$0xff]   ;;  %v573_v22 = vld [vmem:[#allocation8 + $0x20] sm:$0xff]   ;;  %v574_v23 = vld [vmem:[#allocation8 + $0x28] sm:$0xff]  }
  0x3d   :  { %489 = vmatprep.subr.bf16.mxu0 %v652_v0  ;;  %509 = vmatprep.subr.bf16.mxu1 %v652_v0  ;;  %v430_v24 = vld [vmem:[%s798_s4] ss:$0 sm:$0xff]  ;;  %v575_v34 = vld [vmem:[#allocation8 + $0x30] sm:$0xff]   ;;  %v576_v35 = vld [vmem:[#allocation8 + $0x38] sm:$0xff]  }
  0x3e   :  { %v440_v36 = vld [vmem:[%s799_s5] ss:$0 sm:$0xff] }
  0x3f   :  { %v449_v46 = vld [vmem:[%s800_s6] ss:$0 sm:$0xff] }
  0x40   :  { %490 = vmatpush3.bf16.msra.mxu0 %v554_v3  ;;  %510 = vmatpush3.bf16.msra.mxu1 %v563_v8 }
  0x41   :  { %491 = vmatprep.subr.bf16.mxu0 %v652_v0  ;;  %511 = vmatprep.subr.bf16.mxu1 %v652_v0 }
  0x44   :  { %492 = vmatpush3.bf16.msra.mxu0 %v555_v5  ;;  %512 = vmatpush3.bf16.msra.mxu1 %v564_v10 }
  0x45   :  { %493 = vmatprep.subr.bf16.mxu0 %v652_v0  ;;  %513 = vmatprep.subr.bf16.mxu1 %v652_v0 }
  0x48   :  { %494 = vmatpush3.bf16.msra.mxu0 %v556_v7  ;;  %514 = vmatpush3.bf16.msra.mxu1 %v565_v12 }
  0x49   :  { %495 = vmatprep.subr.bf16.mxu0 %v652_v0  ;;  %515 = vmatprep.subr.bf16.mxu1 %v652_v0 }
  0x4c   :  { %496 = vmatpush3.bf16.msra.mxu0 %v557_v9  ;;  %516 = vmatpush3.bf16.msra.mxu1 %v566_v14 }
  0x4d   :  { %497 = vmatprep.subr.bf16.mxu0 %v652_v0  ;;  %517 = vmatprep.subr.bf16.mxu1 %v652_v0 }
  0x50   :  { %498 = vmatpush3.bf16.msra.mxu0 %v558_v11  ;;  %518 = vmatpush3.bf16.msra.mxu1 %v567_v16 }
  0x51   :  { %499 = vmatprep.subr.bf16.mxu0 %v652_v0  ;;  %519 = vmatprep.subr.bf16.mxu1 %v652_v0 }
  0x54   :  { %500 = vmatpush3.bf16.msra.mxu0 %v559_v13  ;;  %520 = vmatpush3.bf16.msra.mxu1 %v568_v17 }
  0x55   :  { %525 = vmatprep.subr.bf16.mxu0 %v652_v0 }
  0x57   :  { %502 = vmatmul.mubr.bf16.vlgmr.msra.gmra.mrb[0].mxu0 %v560_v15 }
  0x58   :  { %541 = vmatprep.mubr.msk.bf16.mxu0 %vm653_vm0, %v652_v0  ;;  %526 = vmatpush3.bf16.msra.mxu0 %v569_v18 }
  0x59   :  { %527 = vmatprep.subr.bf16.mxu0 %v652_v0 }
  0x5c   :  { %528 = vmatpush3.bf16.msra.mxu0 %v570_v19 }
  0x5d   :  { %529 = vmatprep.subr.bf16.mxu0 %v652_v0 }
  0x60   :  { %530 = vmatpush3.bf16.msra.mxu0 %v571_v20 }
  0x61   :  { %531 = vmatprep.subr.bf16.mxu0 %v652_v0 }
  0x64   :  { %532 = vmatpush3.bf16.msra.mxu0 %v572_v21 }
  0x65   :  { %533 = vmatprep.subr.bf16.mxu0 %v652_v0 }
  0x68   :  { %534 = vmatpush3.bf16.msra.mxu0 %v573_v22 }
  0x69   :  { %535 = vmatprep.subr.bf16.mxu0 %v652_v0 }
  0x6c   :  { %536 = vmatpush3.bf16.msra.mxu0 %v574_v23 }
  0x6d   :  { %537 = vmatprep.subr.bf16.mxu0 %v652_v0 }
  0x70   :  { %538 = vmatpush3.bf16.msra.mxu0 %v575_v34 }
  0x71   :  { %539 = vmatprep.subr.bf16.mxu0 %v652_v0 }
  0x74   :  { %540 = vmatpush3.bf16.msra.mxu0 %v576_v35 }
 0x12a   :  { %v181_v25 = vpop.f32.mrb[0].mxu0 }
 0x12b   :  { %v182_v26 = vadd.f32 %v430_v24, %v181_v25  ;;  %v503_v27 = vpop.f32.mrb[1].mxu0 }
 0x12c   :  { %v184_v28 = vpop.f32.mrb[2].mxu0 }
 0x12d   :  { %v185_v29 = vadd.f32 %v430_v24, %v184_v28  ;;  %v504_v30 = vpop.f32.mrb[3].mxu0  ;;  %v188_v31 = vmax.f32 %v182_v26, 0.0 }
 0x12f   :  { %v189_v32 = vmax.f32 %v185_v29, 0.0 }
 0x131   :  { %v190_v33 = vpack.c.bf16 %v189_v32, %v188_v31 }
 0x133   :  { %522 = vmatmul.mubr.bf16.vlgmr.msra.gmra.mrb[0].mxu1 %v190_v33 }
 0x206   :  { %v298_v37 = vpop.f32.mrb[0].mxu1 }
 0x207   :  { %v299_v38 = vadd.f32 %v440_v36, %v298_v37  ;;  %v523_v39 = vpop.f32.mrb[1].mxu1 }
 0x208   :  { %v301_v40 = vpop.f32.mrb[2].mxu1 }
 0x209   :  { %v302_v41 = vadd.f32 %v440_v36, %v301_v40  ;;  %v524_v42 = vpop.f32.mrb[3].mxu1  ;;  %v305_v43 = vmax.f32 %v299_v38, 0.0 }
 0x20b   :  { %v306_v44 = vmax.f32 %v302_v41, 0.0 }
 0x20d   :  { %v307_v45 = vpack.c.bf16 %v306_v44, %v305_v43 }
 0x20f   :  { %542 = vmatmul.mubr.bf16.vlgmr.msra.gmra.mrb[4].mxu0 %v307_v45 }
 0x2e2   :  { %v415_v47 = vpop.f32.mrb[4].mxu0 }
 0x2e3   :  { %v416_v48 = vadd.f32 %v449_v46, %v415_v47  ;;  %v543_v49 = vpop.f32.mrb[5].mxu0 }
 0x2e4   :  { %v418_v50 = vpop.f32.mrb[6].mxu0 }
 0x2e5   :  { %422 = vst [vmem:[%s801_s7] sm:$0xff] %v416_v48  ;;  %v419_v51 = vadd.f32 %v449_v46, %v418_v50  ;;  %v544_v52 = vpop.f32.mrb[7].mxu0 }
 0x2e7   :  { %423 = vst [vmem:[%s801_s7 + $0x8] sm:$0xff] %v419_v51 }
 0x2e8   :  { %428 = vsyncpa [#allocation5], 1 }
 0x2e9   :  { %429 = vsyncpa [#allocation7], 1 }

</bundles_post_ra>
